<compile_context>
chip_gen: v6e
topology: v6e:2x2x1
jax: 0.10.0
libtpu: 0.0.40
codegen_flags: <defaults>
</compile_context>

<pallas_src>
import functools

import jax
import jax.numpy as jnp
from jax.experimental import pallas as pl
from jax.experimental.pallas import tpu as pltpu


def _ada_res_norm_body(x_ref, eps_ref, a_ref, b_ref, beta_ref, o_ref):
    """x block: (1, C, tH, W); param blocks: (1, C, 1, 1); beta_ref may be None."""
    x = x_ref[...].astype(jnp.float32)
    c = x.shape[1]
    w = x.shape[3]
    n_red = c * w

    # Per-(n, h) statistics over (C, W); torch .var default is unbiased (n-1).
    mean = jnp.mean(x, axis=(1, 3), keepdims=True)                 # (1,1,tH,1)
    diff = x - mean
    var = jnp.sum(diff * diff, axis=(1, 3), keepdims=True) * (1.0 / (n_red - 1))

    # Per-channel eps broadcast: (1,1,tH,1) + (1,C,1,1) -> (1,C,tH,1)
    inv_std = jax.lax.rsqrt(var + eps_ref[...])                    # (1,C,tH,1)

    # out = a*x + b*(x-mean)*inv_std + beta  ==  scale*x + shift
    t = b_ref[...] * inv_std                                       # (1,C,tH,1)
    scale = a_ref[...] + t                                         # (1,C,tH,1)
    shift = -t * mean                                              # (1,C,tH,1)
    if beta_ref is not None:
        shift = shift + beta_ref[...]

    o_ref[...] = (scale * x + shift).astype(o_ref.dtype)


def _ada_res_norm_kernel_grad(x_ref, eps_ref, a_ref, b_ref, beta_ref, o_ref):
    _ada_res_norm_body(x_ref, eps_ref, a_ref, b_ref, beta_ref, o_ref)


def _ada_res_norm_kernel_nograd(x_ref, eps_ref, a_ref, b_ref, o_ref):
    # grad=False path: no gamma/beta DMA, no beta add.
    _ada_res_norm_body(x_ref, eps_ref, a_ref, b_ref, None, o_ref)


def _choose_tile_h(H, C, W, target_bytes=2 * 1024 * 1024):
    """Largest H-tile (multiple of 8 dividing H, or full H) keeping the f32
    block under ~target_bytes, so double-buffered in/out blocks plus f32
    intermediates stay well inside the scoped VMEM limit (incl. v7x 64 MiB)."""
    row_bytes = C * W * 4  # f32 intermediates dominate
    if H * row_bytes <= target_bytes:
        return H
    max_th = max(8, (target_bytes // row_bytes) // 8 * 8)
    th = min(max_th, (H // 8) * 8)
    while th >= 8:
        if H % th == 0:
            return th
        th -= 8
    return H  # fallback: full H block (always legal)


@functools.partial(jax.jit, static_argnames=("grad",))
def ada_res_norm(x, rho, gamma, beta, eps, grad=True):
    """x: (N, C, H, W) like PyTorch. rho/gamma/beta/eps: (1, C, 1, 1)."""
    N, C, H, W = x.shape
    tH = _choose_tile_h(H, C, W)
    grid = (N, H // tH)

    rho_f = rho.reshape(1, C, 1, 1).astype(jnp.float32)
    eps_f = eps.reshape(1, C, 1, 1).astype(jnp.float32)

    if grad:
        gamma_f = gamma.reshape(1, C, 1, 1).astype(jnp.float32)
        beta_f = beta.reshape(1, C, 1, 1).astype(jnp.float32)
        a = gamma_f * rho_f            # gamma * rho
        b = gamma_f * (1.0 - rho_f)    # gamma * (1 - rho)
    else:
        a = rho_f
        b = 1.0 - rho_f

    x_spec = pl.BlockSpec((1, C, tH, W), lambda n, h: (n, 0, h, 0))
    p_spec = pl.BlockSpec((1, C, 1, 1), lambda n, h: (0, 0, 0, 0))

    if grad:
        kernel = _ada_res_norm_kernel_grad
        in_specs = [x_spec, p_spec, p_spec, p_spec, p_spec]
        args = (x, eps_f, a, b, beta_f)
    else:
        kernel = _ada_res_norm_kernel_nograd
        in_specs = [x_spec, p_spec, p_spec, p_spec]
        args = (x, eps_f, a, b)

    return pl.pallas_call(
        kernel,
        out_shape=jax.ShapeDtypeStruct((N, C, H, W), x.dtype),
        grid_spec=pltpu.PrefetchScalarGridSpec(
            num_scalar_prefetch=0,
            grid=grid,
            in_specs=in_specs,
            out_specs=pl.BlockSpec((1, C, tH, W), lambda n, h: (n, 0, h, 0)),
        ),
        compiler_params=pltpu.CompilerParams(
            dimension_semantics=("parallel", "parallel"),
            vmem_limit_bytes=32 * 1024 * 1024,
        ),
    )(*args)


def _reference(x, rho, gamma, beta, eps, grad=True):
    """Pure-JAX reference mirroring the PyTorch forward exactly."""
    xf = x.astype(jnp.float32)
    mean = jnp.mean(xf, axis=(1, 3), keepdims=True)
    var = jnp.var(xf, axis=(1, 3), keepdims=True, ddof=1)  # torch unbiased var
    ifn = (xf - mean) / jnp.sqrt(var + eps)
    res = rho * xf + (1.0 - rho) * ifn
    if grad:
        res = gamma * res + beta
    return res.astype(x.dtype)


if __name__ == "__main__":
    key = jax.random.PRNGKey(0)
    N, C, H, W = 2, 4, 16, 16

    x = jax.random.normal(key, (N, C, H, W), dtype=jnp.float32)

    # Deterministic parameter init matching AdaResNorm.__init__.
    eps = jnp.full((1, C, 1, 1), 1e-5, jnp.float32)
    rho = jnp.full((1, C, 1, 1), 0.5, jnp.float32)
    gamma = jnp.ones((1, C, 1, 1), jnp.float32)
    beta = jnp.zeros((1, C, 1, 1), jnp.float32)

    # grad=True path (affine kernel)
    out_g = jax.block_until_ready(ada_res_norm(x, rho, gamma, beta, eps, grad=True))
    ref_g = _reference(x, rho, gamma, beta, eps, grad=True)
    assert out_g.shape == (N, C, H, W)
    assert jnp.allclose(out_g, ref_g, atol=1e-4, rtol=1e-4)

    # grad=False path (no gamma/beta kernel)
    out_n = jax.block_until_ready(ada_res_norm(x, rho, gamma, beta, eps, grad=False))
    ref_n = _reference(x, rho, gamma, beta, eps, grad=False)
    assert out_n.shape == (N, C, H, W)
    assert jnp.allclose(out_n, ref_n, atol=1e-4, rtol=1e-4)

    print("KERNEL_OK")
</pallas_src>

<mosaic_0001>
module attributes {stable_mosaic.version = 11 : i64} {
  func.func @_ada_res_norm_kernel_grad(%arg0: i32, %arg1: i32, %arg2: memref<1x4x16x16xf32, #tpu.memory_space<vmem>>, %arg3: memref<1x4x1x1xf32, #tpu.memory_space<vmem>>, %arg4: memref<1x4x1x1xf32, #tpu.memory_space<vmem>>, %arg5: memref<1x4x1x1xf32, #tpu.memory_space<vmem>>, %arg6: memref<1x4x1x1xf32, #tpu.memory_space<vmem>>, %arg7: memref<1x4x16x16xf32, #tpu.memory_space<vmem>>) attributes {dimension_semantics = [#tpu.dimension_semantics<parallel>, #tpu.dimension_semantics<parallel>], iteration_bounds = array<i64: 2, 1>, scalar_prefetch = 0 : i64, scratch_operands = 0 : i64, tpu.core_type = #tpu.core_type<tc>, window_params = [{transform_indices = @transform_0, window_bounds = array<i64: 1, 4, 16, 16>}, {pipeline_mode = #tpu.pipeline_mode<synchronous>, transform_indices = @transform_1, window_bounds = array<i64: 1, 4, 1, 1>}, {pipeline_mode = #tpu.pipeline_mode<synchronous>, transform_indices = @transform_2, window_bounds = array<i64: 1, 4, 1, 1>}, {pipeline_mode = #tpu.pipeline_mode<synchronous>, transform_indices = @transform_3, window_bounds = array<i64: 1, 4, 1, 1>}, {pipeline_mode = #tpu.pipeline_mode<synchronous>, transform_indices = @transform_4, window_bounds = array<i64: 1, 4, 1, 1>}, {transform_indices = @transform_5, window_bounds = array<i64: 1, 4, 16, 16>}]} {
    %c0 = arith.constant 0 : index
    %c0_0 = arith.constant 0 : index
    %c0_1 = arith.constant 0 : index
    %c0_2 = arith.constant 0 : index
    %0 = vector.load %arg2[%c0, %c0_0, %c0_1, %c0_2] : memref<1x4x16x16xf32, #tpu.memory_space<vmem>>, vector<1x4x16x16xf32>
    %cst = arith.constant dense<0.000000e+00> : vector<1x16xf32>
    %1 = vector.multi_reduction <add>, %0, %cst [1, 3] : vector<1x4x16x16xf32> to vector<1x16xf32>
    %2 = vector.shape_cast %1 : vector<1x16xf32> to vector<1x1x16x1xf32>
    %cst_3 = arith.constant 6.400000e+01 : f32
    %3 = vector.broadcast %cst_3 : f32 to vector<1x1x16x1xf32>
    %4 = arith.divf %2, %3 : vector<1x1x16x1xf32>
    %5 = vector.broadcast %4 : vector<1x1x16x1xf32> to vector<1x4x16x16xf32>
    %6 = arith.subf %0, %5 : vector<1x4x16x16xf32>
    %7 = arith.mulf %6, %6 : vector<1x4x16x16xf32>
    %cst_4 = arith.constant dense<0.000000e+00> : vector<1x16xf32>
    %8 = vector.multi_reduction <add>, %7, %cst_4 [1, 3] : vector<1x4x16x16xf32> to vector<1x16xf32>
    %9 = vector.shape_cast %8 : vector<1x16xf32> to vector<1x1x16x1xf32>
    %cst_5 = arith.constant 0.0158730168 : f32
    %10 = vector.broadcast %cst_5 : f32 to vector<1x1x16x1xf32>
    %11 = arith.mulf %9, %10 : vector<1x1x16x1xf32>
    %c0_6 = arith.constant 0 : index
    %c0_7 = arith.constant 0 : index
    %c0_8 = arith.constant 0 : index
    %c0_9 = arith.constant 0 : index
    %12 = vector.load %arg3[%c0_6, %c0_7, %c0_8, %c0_9] : memref<1x4x1x1xf32, #tpu.memory_space<vmem>>, vector<1x4x1x1xf32>
    %13 = vector.broadcast %11 : vector<1x1x16x1xf32> to vector<1x4x16x1xf32>
    %14 = vector.broadcast %12 : vector<1x4x1x1xf32> to vector<1x4x16x1xf32>
    %15 = arith.addf %13, %14 : vector<1x4x16x1xf32>
    %16 = math.rsqrt %15 : vector<1x4x16x1xf32>
    %c0_10 = arith.constant 0 : index
    %c0_11 = arith.constant 0 : index
    %c0_12 = arith.constant 0 : index
    %c0_13 = arith.constant 0 : index
    %17 = vector.load %arg5[%c0_10, %c0_11, %c0_12, %c0_13] : memref<1x4x1x1xf32, #tpu.memory_space<vmem>>, vector<1x4x1x1xf32>
    %18 = vector.broadcast %17 : vector<1x4x1x1xf32> to vector<1x4x16x1xf32>
    %19 = arith.mulf %18, %16 : vector<1x4x16x1xf32>
    %c0_14 = arith.constant 0 : index
    %c0_15 = arith.constant 0 : index
    %c0_16 = arith.constant 0 : index
    %c0_17 = arith.constant 0 : index
    %20 = vector.load %arg4[%c0_14, %c0_15, %c0_16, %c0_17] : memref<1x4x1x1xf32, #tpu.memory_space<vmem>>, vector<1x4x1x1xf32>
    %21 = vector.broadcast %20 : vector<1x4x1x1xf32> to vector<1x4x16x1xf32>
    %22 = arith.addf %21, %19 : vector<1x4x16x1xf32>
    %cst_18 = arith.constant 0.000000e+00 : f32
    %23 = vector.broadcast %cst_18 : f32 to vector<1x4x16x1xf32>
    %24 = arith.subf %23, %19 : vector<1x4x16x1xf32>
    %25 = vector.broadcast %4 : vector<1x1x16x1xf32> to vector<1x4x16x1xf32>
    %26 = arith.mulf %24, %25 : vector<1x4x16x1xf32>
    %c0_19 = arith.constant 0 : index
    %c0_20 = arith.constant 0 : index
    %c0_21 = arith.constant 0 : index
    %c0_22 = arith.constant 0 : index
    %27 = vector.load %arg6[%c0_19, %c0_20, %c0_21, %c0_22] : memref<1x4x1x1xf32, #tpu.memory_space<vmem>>, vector<1x4x1x1xf32>
    %28 = vector.broadcast %27 : vector<1x4x1x1xf32> to vector<1x4x16x1xf32>
    %29 = arith.addf %26, %28 : vector<1x4x16x1xf32>
    %30 = vector.broadcast %22 : vector<1x4x16x1xf32> to vector<1x4x16x16xf32>
    %31 = arith.mulf %30, %0 : vector<1x4x16x16xf32>
    %32 = vector.broadcast %29 : vector<1x4x16x1xf32> to vector<1x4x16x16xf32>
    %33 = arith.addf %31, %32 : vector<1x4x16x16xf32>
    %c0_23 = arith.constant 0 : index
    %c0_24 = arith.constant 0 : index
    %c0_25 = arith.constant 0 : index
    %c0_26 = arith.constant 0 : index
    %34 = vector.load %arg7[%c0_23, %c0_24, %c0_25, %c0_26] : memref<1x4x16x16xf32, #tpu.memory_space<vmem>>, vector<1x4x16x16xf32>
    tpu.vector_store %arg7[%c0_23, %c0_24, %c0_25, %c0_26], %33 {strides = array<i32>} : memref<1x4x16x16xf32, #tpu.memory_space<vmem>>, vector<1x4x16x16xf32>,
    return
  }
  func.func @transform_0(%arg0: i32, %arg1: i32) -> (i32, i32, i32, i32) {
    %c0_i32 = arith.constant 0 : i32
    %c0_i32_0 = arith.constant 0 : i32
    %c0_i32_1 = arith.constant 0 : i32
    return %arg0, %c0_i32, %arg1, %c0_i32_0 : i32, i32, i32, i32
  }
  func.func @transform_1(%arg0: i32, %arg1: i32) -> (i32, i32, i32, i32) {
    %c0_i32 = arith.constant 0 : i32
    %c0_i32_0 = arith.constant 0 : i32
    %c0_i32_1 = arith.constant 0 : i32
    %c0_i32_2 = arith.constant 0 : i32
    %c0_i32_3 = arith.constant 0 : i32
    return %c0_i32, %c0_i32_0, %c0_i32_1, %c0_i32_2 : i32, i32, i32, i32
  }
  func.func @transform_2(%arg0: i32, %arg1: i32) -> (i32, i32, i32, i32) {
    %c0_i32 = arith.constant 0 : i32
    %c0_i32_0 = arith.constant 0 : i32
    %c0_i32_1 = arith.constant 0 : i32
    %c0_i32_2 = arith.constant 0 : i32
    %c0_i32_3 = arith.constant 0 : i32
    return %c0_i32, %c0_i32_0, %c0_i32_1, %c0_i32_2 : i32, i32, i32, i32
  }
  func.func @transform_3(%arg0: i32, %arg1: i32) -> (i32, i32, i32, i32) {
    %c0_i32 = arith.constant 0 : i32
    %c0_i32_0 = arith.constant 0 : i32
    %c0_i32_1 = arith.constant 0 : i32
    %c0_i32_2 = arith.constant 0 : i32
    %c0_i32_3 = arith.constant 0 : i32
    return %c0_i32, %c0_i32_0, %c0_i32_1, %c0_i32_2 : i32, i32, i32, i32
  }
  func.func @transform_4(%arg0: i32, %arg1: i32) -> (i32, i32, i32, i32) {
    %c0_i32 = arith.constant 0 : i32
    %c0_i32_0 = arith.constant 0 : i32
    %c0_i32_1 = arith.constant 0 : i32
    %c0_i32_2 = arith.constant 0 : i32
    %c0_i32_3 = arith.constant 0 : i32
    return %c0_i32, %c0_i32_0, %c0_i32_1, %c0_i32_2 : i32, i32, i32, i32
  }
  func.func @transform_5(%arg0: i32, %arg1: i32) -> (i32, i32, i32, i32) {
    %c0_i32 = arith.constant 0 : i32
    %c0_i32_0 = arith.constant 0 : i32
    %c0_i32_1 = arith.constant 0 : i32
    return %arg0, %c0_i32, %arg1, %c0_i32_0 : i32, i32, i32, i32
  }
}

</mosaic_0001>

<bundles_post_ra>
// kernel: ada_res_norm.1
= control target key start
LH: loop header
LB: loop body
LE: loop exit
PB: predicated region body
PF: predicated region fallthrough
CT: control target
= control target key end

     0   :  { %10 = vsyncpa [#allocation3], 0  ;;  %s1262_s0 = inlined_call_operand.hbm [shape: f32[2,4,16,16], index: 0, kind: input, shape index: {}]   ;;  %s1263_s1 = inlined_call_operand.vmem [shape: f32[1,4,1,1], index: 1, kind: input, shape index: {}]   ;;  %s1264_s2 = inlined_call_operand.vmem [shape: f32[1,4,1,1], index: 2, kind: input, shape index: {}]   ;;  %s1265_s3 = inlined_call_operand.vmem [shape: f32[1,4,1,1], index: 3, kind: input, shape index: {}]   ;;  %s1266_s4 = inlined_call_operand.vmem [shape: f32[1,4,1,1], index: 4, kind: input, shape index: {}]   ;;  %s1267_s5 = inlined_call_operand.hbm [shape: f32[2,4,16,16], index: 5, kind: output, shape index: {}]  }
   0x1   :  { %12 = vsyncpa [#allocation3 + $0x1], 0 }
   0x2   :  { %13 = vsyncpa [#allocation4], 0 }
   0x3   :  { %15 = vsyncpa [#allocation4 + $0x1], 0  ;;  %s969_s18 = smov 0   ;;  %s971_s19 = smov 0  }
   0x4   :  { %s973_s20 = smov 0   ;;  %s975_s21 = smov 0  }
   0x5   :  { %s977_s22 = smov 0   ;;  %s979_s23 = smov 0  }
   0x6 LB: > { %s704_s24 = sadd.s32 4294967295, %s930_s23   ;;  %s705_s25 = sadd.s32 4294967294, %s930_s23   ;;  %s930_s23 = sphi %s979_s23, %s21_s23   ;;  %s926_s22 = sphi %s977_s22, %s1278_s22   ;;  %s922_s21 = sphi %s975_s21, %s1277_s21   ;;  %s918_s20 = sphi %s973_s20, %s1276_s20   ;;  %s914_s19 = sphi %s971_s19, %s1275_s19   ;;  %s910_s18 = sphi %s969_s18, %s1274_s18  }
   0x7   : > { %s33_s26 = sadd.s32 1, %s926_s22  ;;  %s42_s27 = sadd.s32 1, %s918_s20 }
   0x8   : > { %p35_p0 = scmp.ge.s32.totalorder %s33_s26, 2  ;;  %p49_p1 = scmp.ne.s32.totalorder %s918_s20, %s914_s19 }
   0x9   : > { %p50_p2 = scmp.eq.s32.totalorder %s930_s23, 0  ;;  %p55_p3 = scmp.ne.s32.totalorder %s914_s19, %s910_s18 }
   0xa   : > { %s1280_s26 = smov (%p35_p0, %s33_s26), 0  ;;  %p56_p5 = scmp.eq.s32.totalorder %s704_s24, 0 }
   0xb   : > { %p1010_p4 = por %p50_p2, %p49_p1  ;;  %s37_s29 = ssub.s32 %s926_s22, %s1280_s26 }
   0xc   : > { %p165_p6 = scmp.eq.s32.totalorder %s704_s24, 1  ;;  %p40_p7 = scmp.eq.s32.totalorder %s37_s29, 0 }
   0xd   : > { %p1016_p8 = por %p56_p5, %p55_p3  ;;  %p171_p10 = scmp.eq.s32.totalorder %s705_s25, 1 }
   0xe   : > { %p1020_p9 = por %p165_p6, %p49_p1  ;;  %p749_p13 = scmp.lt.s32.totalorder %s930_s23, 2 }
   0xf   : > { %s1025_s7 = scalar_select %p40_p7, %s918_s20, %s42_s27  }
  0x10   : > { %p1027_p11 = por %p171_p10, %p55_p3  ;;  %s203_s9 = sand.u32 1, %s918_s20  }
  0x11   : > { %s708_s10 = sshll.u32 %s203_s9, 6  ;;  %s735_s11 = sshll.u32 %s926_s22, 10 }
  0x12   : > { %s215_s14 = scalar_lea.hbm %s1262_s0, %s735_s11  ;;  %s207_s15 = scalar_lea.vmem [#allocation2], %s708_s10 }
  0x13   : > { %s216_s16 = sshll.u32 %s207_s15, 4  ;;  %p1040_p0 = pnand %p749_p13, %p1010_p4  ;;  %s217_s16 = int_to_ptr.vmem [resolvable:$true] %s216_s16 }
  0x14   : > { %p711_p1 = scmp.ge.s32.totalorder %s930_s23, 1  ;;  %s204_s24 = scalar_lea.sflag [#allocation3], %s203_s9 }
  0x15   : > { %p824_p2 = pneg %p1040_p0  ;;  %s835_s25 = scalar_lea.vmem %s217_s16, 1024 }
  0x16   : > { %p836_p3 = scmp.ne.s32.totalorder %s217_s16, %s835_s25  ;;  %s932_s27 = smov [#allocation2]  }
  0x17   : > { %s840_s29 = sshll.u32 %s932_s27, 4  ;;  %s841_s29 = int_to_ptr.vmem [resolvable:$false] %s840_s29 }
  0x18   : > { %p838_p5 = pnand %p836_p3, %p824_p2  ;;  %s842_s10 = scalar_lea.vmem %s841_s29, 2048 }
  0x19   : > { %p843_p7 = scmp.lt.s32.totalorder %s217_s16, %s841_s29  ;;  %p844_p10 = scmp.lt.s32.totalorder %s842_s10, %s835_s25 }
  0x1a   : > { %p839_p6 = pneg %p838_p5 }
  0x1b   : > { %p845_p12 = por %p844_p10, %p843_p7 }
  0x1d   : > { %p846_p4 = pnand %p845_p12, %p839_p6 }
  0x1f   : > { %849 = shalt.err (!%p846_p4)
}
  0x20   : > { %s933_s28 = smov 128   ;;  %s934_s9 = smov 8  }
  0x21   : > { %744 = dma.hbm_to_vmem [thread:$0]  (!%p1040_p0), %s215_s14, 1024, %s217_s16, %s204_s24, %s933_s28, %s933_s28, %s934_s9  }
  0x22   : > { %p224_p13 = scmp.lt.s32.totalorder %s930_s23, 3 }
  0x24   : > { %p225_p2 = pnand %p711_p1, %p224_p13 }
  0x25   : > { %s1053_s11 = sand.u32 (!%p225_p2), 1, %s914_s19  }
  0x26   : > { %228 = sbr.rel (%p225_p2) target bundleno = 547 (0x223), region = 40  ;;  %s712_s12 = sshll.u32 (!%p225_p2), %s1053_s11, 6 }
  0x27   : > { %s231_s13 = scalar_lea.sflag (!%p225_p2), [#allocation3], %s1053_s11  ;;  %s234_s15 = scalar_lea.vmem (!%p225_p2), [#allocation2], %s712_s12 }
  0x2b   : > { %901 = dma.done.wait (%p1016_p8), %s231_s13, 1024  }
  0x2c   : > { %903 = vsyncadd (%p1016_p8), %s231_s13, 4294966272  ;;  %vm271_vm0 = vcmask 130048   ;;  %v1063_v0 = vld [vmem:[%s234_s15] sm:$0xff]  ;;  %v1065_v1 = vld [vmem:[%s234_s15 + $0x10] sm:$0xff]  ;;  %v935_v56 = vmov 0   ;;  %s1182_s27 = scalar_lea.vmem [#allocation5], %s712_s12 }
  0x2d   : > { %v1067_v2 = vld [vmem:[%s234_s15 + $0x20] sm:$0xff]  ;;  %v1069_v3 = vld [vmem:[%s234_s15 + $0x30] sm:$0xff]  ;;  %v272_v4 = vsel %vm271_vm0, %v1063_v0, 0.0  ;;  %v273_v5 = vsel %vm271_vm0, %v1065_v1, 0.0  ;;  %v1077_v7 = vld [vmem:[%s234_s15 + $0x8] sm:$0xff]  ;;  %804 = vset.pattern.permute.xlu0 %v935_v56  ;;  %805 = vset.pattern.permute.xlu1 %v935_v56  ;;  %s736_s12 = sshll.u32 %s922_s21, 10 }
  0x2e   : > { %v275_v6 = vsel %vm271_vm0, %v1067_v2, 0.0  ;;  %v1079_v8 = vld [vmem:[%s234_s15 + $0x18] sm:$0xff]  ;;  %v274_v9 = vadd.f32 %v273_v5, %v272_v4  ;;  %v1081_v10 = vld [vmem:[%s234_s15 + $0x28] sm:$0xff]  ;;  %v281_v12 = vsel %vm271_vm0, %v1077_v7, 0.0  ;;  %v277_v14 = vsel %vm271_vm0, %v1069_v3, 0.0  ;;  %s617_s29 = sshll.u32 %s1182_s27, 4  ;;  %s1210_s9 = scalar_lea.hbm %s1267_s5, %s736_s12  ;;  %s1212_s29 = int_to_ptr.vmem [resolvable:$true] %s617_s29 }
  0x2f   : > { %v1083_v11 = vld [vmem:[%s234_s15 + $0x38] sm:$0xff]  ;;  %v282_v13 = vsel %vm271_vm0, %v1079_v8, 0.0  ;;  %v284_v16 = vsel %vm271_vm0, %v1081_v10, 0.0  ;;  %v714_v57 = vld [vmem:[%s1263_s1] ss:$0 sm:$0xff]  ;;  %s602_s21 = scalar_lea.sflag [#allocation4], %s1053_s11 }
  0x30   : > { %v283_v15 = vadd.f32 %v282_v13, %v281_v12  ;;  %v276_v17 = vadd.f32 %v275_v6, %v274_v9  ;;  %v286_v19 = vsel %vm271_vm0, %v1083_v11, 0.0  ;;  %v715_v60 = vld [vmem:[%s1263_s1 + $0x1] ss:$0 sm:$0xff]  ;;  %v716_v5 = vld [vmem:[%s1263_s1 + $0x2] ss:$0 sm:$0xff]  ;;  %s850_s13 = scalar_lea.vmem %s1212_s29, 1024 }
  0x31   : > { %v717_v13 = vld [vmem:[%s1263_s1 + $0x3] ss:$0 sm:$0xff]  ;;  %p851_p8 = scmp.ne.s32.totalorder %s1212_s29, %s850_s13  ;;  %s936_s15 = smov [#allocation5]  }
  0x32   : > { %v285_v18 = vadd.f32 %v284_v16, %v283_v15  ;;  %v278_v20 = vadd.f32 %v277_v14, %v276_v17  ;;  %v718_v16 = vld [vmem:[%s1265_s3] ss:$0 sm:$0xff]  ;;  %s854_s30 = sshll.u32 %s936_s15, 4  ;;  %s855_s30 = int_to_ptr.vmem [resolvable:$false] %s854_s30 }
  0x33   : > { %p852_p12 = pnand %p851_p8, %p1020_p9  ;;  %s856_s14 = scalar_lea.vmem %s855_s30, 2048 }
  0x34   : > { %279 = vadd.xlane.f32.xlu0 %v278_v20  ;;  %v287_v21 = vadd.f32 %v286_v19, %v285_v18  ;;  %v722_v18 = vld [vmem:[%s1264_s2] ss:$0 sm:$0xff]  ;;  %p857_p1 = scmp.lt.s32.totalorder %s1212_s29, %s855_s30  ;;  %p858_p3 = scmp.lt.s32.totalorder %s856_s14, %s850_s13 }
  0x35   : > { %p853_p0 = pneg %p852_p12 }
  0x36   : > { %p859_p5 = por %p858_p3, %p857_p1 }
  0x38   : > { %288 = vadd.xlane.f32.xlu0 %v287_v21  ;;  %p860_p6 = pnand %p859_p5, %p853_p0 }
  0xbd   : > { %v280_v22 = vpop.xlane.xlu0 %279 }
  0xbe   : > { %v1095_v23 = vmul.f32 0.015625, %v280_v22 }
  0xc0   : > { %v293_v24 = vsub.f32 %v1063_v0, %v1095_v23  ;;  %v295_v25 = vsub.f32 %v1065_v1, %v1095_v23  ;;  %v297_v26 = vsub.f32 %v1067_v2, %v1095_v23  ;;  %v299_v27 = vsub.f32 %v1069_v3, %v1095_v23 }
  0xc1   : > { %v289_v28 = vpop.xlane.xlu0 %288 }
  0xc2   : > { %v1105_v29 = vmul.f32 0.015625, %v289_v28  ;;  %v301_v30 = vmul.f32 %v293_v24, %v293_v24  ;;  %v303_v31 = vmul.f32 %v295_v25, %v295_v25  ;;  %v305_v32 = vmul.f32 %v297_v26, %v297_v26  ;;  %v719_v24 = vld [vmem:[%s1265_s3 + $0x1] ss:$0 sm:$0xff] }
  0xc3   : > { %v307_v33 = vmul.f32 %v299_v27, %v299_v27 }
  0xc4   : > { %v309_v34 = vsel %vm271_vm0, %v301_v30, 0.0  ;;  %v310_v35 = vsel %vm271_vm0, %v303_v31, 0.0  ;;  %v294_v36 = vsub.f32 %v1077_v7, %v1105_v29  ;;  %v296_v38 = vsub.f32 %v1079_v8, %v1105_v29 }
  0xc5   : > { %v311_v37 = vadd.f32 %v310_v35, %v309_v34  ;;  %v298_v39 = vsub.f32 %v1081_v10, %v1105_v29  ;;  %v312_v40 = vsel %vm271_vm0, %v305_v32, 0.0  ;;  %v300_v41 = vsub.f32 %v1083_v11, %v1105_v29  ;;  %v720_v32 = vld [vmem:[%s1265_s3 + $0x2] ss:$0 sm:$0xff]  ;;  %v723_v35 = vld [vmem:[%s1264_s2 + $0x1] ss:$0 sm:$0xff] }
  0xc6   : > { %v302_v42 = vmul.f32 %v294_v36, %v294_v36  ;;  %v304_v44 = vmul.f32 %v296_v38, %v296_v38  ;;  %v314_v46 = vsel %vm271_vm0, %v307_v33, 0.0 }
  0xc7   : > { %v313_v43 = vadd.f32 %v312_v40, %v311_v37  ;;  %v306_v45 = vmul.f32 %v298_v39, %v298_v39  ;;  %v308_v49 = vmul.f32 %v300_v41, %v300_v41  ;;  %v726_v40 = vld [vmem:[%s1266_s4] ss:$0 sm:$0xff] }
  0xc8   : > { %v318_v47 = vsel %vm271_vm0, %v302_v42, 0.0  ;;  %v319_v50 = vsel %vm271_vm0, %v304_v44, 0.0  ;;  %v721_v42 = vld [vmem:[%s1265_s3 + $0x3] ss:$0 sm:$0xff] }
  0xc9   : > { %v315_v48 = vadd.f32 %v314_v46, %v313_v43  ;;  %v320_v51 = vadd.f32 %v319_v50, %v318_v47  ;;  %v321_v52 = vsel %vm271_vm0, %v306_v45, 0.0  ;;  %v323_v54 = vsel %vm271_vm0, %v308_v49, 0.0 }
  0xcb   : > { %316 = vadd.xlane.f32.xlu1 %v315_v48  ;;  %v322_v53 = vadd.f32 %v321_v52, %v320_v51  ;;  %v727_v48 = vld [vmem:[%s1266_s4 + $0x1] ss:$0 sm:$0xff] }
  0xcd   : > { %v324_v55 = vadd.f32 %v323_v54, %v322_v53  ;;  %v724_v54 = vld [vmem:[%s1264_s2 + $0x2] ss:$0 sm:$0xff] }
  0xcf   : > { %325 = vadd.xlane.f32.xlu1 %v324_v55  ;;  %v728_v55 = vld [vmem:[%s1266_s4 + $0x2] ss:$0 sm:$0xff] }
 0x154   : > { %v317_v58 = vpop.xlane.xlu1 %316 }
 0x155   : > { %v327_v59 = vmul.f32 0.015873017, %v317_v58 }
 0x157   : > { %v357_v61 = vadd.f32 %v714_v57, %v327_v59  ;;  %v359_v62 = vadd.f32 %v715_v60, %v327_v59  ;;  %v361_v15 = vadd.f32 %v716_v5, %v327_v59  ;;  %v363_v22 = vadd.f32 %v717_v13, %v327_v59 }
 0x158   : > { %v326_v63 = vpop.xlane.xlu1 %325 }
 0x159   : > { %806 = vrsqrt.f32 %v357_v61  ;;  %v328_v4 = vmul.f32 0.015873017, %v326_v63 }
 0x15a   : > { %808 = vrsqrt.f32 %v359_v62 }
 0x15b   : > { %v358_v6 = vadd.f32 %v714_v57, %v328_v4  ;;  %v360_v9 = vadd.f32 %v715_v60, %v328_v4  ;;  %v362_v12 = vadd.f32 %v716_v5, %v328_v4  ;;  %v364_v14 = vadd.f32 %v717_v13, %v328_v4  ;;  %v729_v60 = vld [vmem:[%s1266_s4 + $0x3] ss:$0 sm:$0xff] }
 0x15c   : > { %v725_v4 = vld [vmem:[%s1264_s2 + $0x3] ss:$0 sm:$0xff] }
 0x15d   : > { %810 = vrsqrt.f32 %v358_v6 }
 0x15e   : > { %812 = vrsqrt.f32 %v360_v9 }
 0x15f   : > { %814 = vrsqrt.f32 %v362_v12 }
 0x160   : > { %816 = vrsqrt.f32 %v364_v14 }
 0x161   : > { %818 = vrsqrt.f32 %v361_v15 }
 0x162   : > { %820 = vrsqrt.f32 %v363_v22 }
 0x166   : > { %v807_v17 = vpop.eup %806 }
 0x167   : > { %v401_v19 = vmul.f32 %v807_v17, %v718_v16  ;;  %v809_v21 = vpop.eup %808 }
 0x168   : > { %v403_v30 = vmul.f32 %v809_v21, %v719_v24 }
 0x169   : > { %v437_v20 = vadd.f32 %v722_v18, %v401_v19  ;;  %v445_v6 = vsub.f32 0.0, %v401_v19 }
 0x16a   : > { %v811_v25 = vpop.eup %810  ;;  %v439_v41 = vadd.f32 %v723_v35, %v403_v30  ;;  %v447_v12 = vsub.f32 0.0, %v403_v30 }
 0x16b   : > { %499 = vperm.xlu0 %804, %v437_v20   ;;  %v813_v26 = vpop.eup %812  ;;  %v402_v27 = vmul.f32 %v811_v25, %v718_v16  ;;  %v453_v9 = vmul.f32 %v445_v6, %v1095_v23 }
 0x16c   : > { %v815_v28 = vpop.eup %814  ;;  %v404_v31 = vmul.f32 %v813_v26, %v719_v24  ;;  %v455_v14 = vmul.f32 %v447_v12, %v1095_v23 }
 0x16d   : > { %v438_v33 = vadd.f32 %v722_v18, %v402_v27  ;;  %v446_v34 = vsub.f32 0.0, %v402_v27  ;;  %v406_v36 = vmul.f32 %v815_v28, %v720_v32  ;;  %v817_v37 = vpop.eup %816  ;;  %v489_v13 = vadd.f32 %v726_v40, %v453_v9 }
 0x16e   : > { %v448_v38 = vsub.f32 0.0, %v404_v31  ;;  %v819_v43 = vpop.eup %818  ;;  %v408_v47 = vmul.f32 %v817_v37, %v721_v42  ;;  %v440_v51 = vadd.f32 %v723_v35, %v404_v31  ;;  %v491_v16 = vadd.f32 %v727_v48, %v455_v14 }
 0x16f   : > { %504 = vperm.xlu1 %805, %v438_v33   ;;  %v454_v39 = vmul.f32 %v446_v34, %v1105_v29  ;;  %v450_v46 = vsub.f32 0.0, %v406_v36  ;;  %v405_v49 = vmul.f32 %v819_v43, %v720_v32  ;;  %v821_v59 = vpop.eup %820  ;;  %v442_v62 = vadd.f32 %v724_v54, %v406_v36 }
 0x170   : > { %v456_v45 = vmul.f32 %v448_v38, %v1105_v29  ;;  %v452_v53 = vsub.f32 0.0, %v408_v47  ;;  %v407_v63 = vmul.f32 %v821_v59, %v721_v42 }
 0x171   : > { %v490_v44 = vadd.f32 %v726_v40, %v454_v39  ;;  %v458_v52 = vmul.f32 %v450_v46, %v1105_v29  ;;  %v441_v57 = vadd.f32 %v724_v54, %v405_v49  ;;  %v449_v15 = vsub.f32 0.0, %v405_v49 }
 0x172   : > { %v492_v50 = vadd.f32 %v727_v48, %v456_v45  ;;  %v460_v58 = vmul.f32 %v452_v53, %v1105_v29  ;;  %v443_v5 = vadd.f32 %v725_v4, %v407_v63  ;;  %v444_v29 = vadd.f32 %v725_v4, %v408_v47 }
 0x173   : > { %552 = vperm.xlu0 %804, %v490_v44   ;;  %509 = vperm.xlu1 %805, %v439_v41   ;;  %v494_v56 = vadd.f32 %v728_v55, %v458_v52  ;;  %v457_v17 = vmul.f32 %v449_v15, %v1095_v23  ;;  %v451_v18 = vsub.f32 0.0, %v407_v63 }
 0x174   : > { %v496_v61 = vadd.f32 %v729_v60, %v460_v58 }
 0x175   : > { %v493_v20 = vadd.f32 %v728_v55, %v457_v17  ;;  %v459_v19 = vmul.f32 %v451_v18, %v1095_v23 }
 0x177   : > { %562 = vperm.xlu0 %804, %v492_v50   ;;  %514 = vperm.xlu1 %805, %v440_v51   ;;  %v495_v21 = vadd.f32 %v729_v60, %v459_v19 }
 0x17b   : > { %572 = vperm.xlu0 %804, %v494_v56   ;;  %519 = vperm.xlu1 %805, %v441_v57  }
 0x17f   : > { %582 = vperm.xlu0 %804, %v496_v61   ;;  %524 = vperm.xlu1 %805, %v442_v62  }
 0x183   : > { %529 = vperm.xlu1 %805, %v443_v5  }
 0x187   : > { %534 = vperm.xlu1 %805, %v444_v29  }
 0x18b   : > { %547 = vperm.xlu1 %805, %v489_v13  }
 0x18f   : > { %557 = vperm.xlu1 %805, %v491_v16  }
 0x193   : > { %567 = vperm.xlu1 %805, %v493_v20  }
 0x197   : > { %577 = vperm.xlu1 %805, %v495_v21  }
 0x1e6   : > { %v500_v22 = vpop.permute.xlu0 %499 }
 0x1e7   : > { %v537_v40 = vmul.f32 %v500_v22, %v1063_v0 }
 0x1ea   : > { %v505_v24 = vpop.permute.xlu1 %504 }
 0x1eb   : > { %v538_v25 = vmul.f32 %v505_v24, %v1077_v7 }
 0x1ee   : > { %v510_v26 = vpop.permute.xlu1 %509  ;;  %v553_v27 = vpop.permute.xlu0 %552 }
 0x1ef   : > { %v586_v28 = vadd.f32 %v553_v27, %v538_v25  ;;  %v539_v43 = vmul.f32 %v510_v26, %v1065_v1 }
 0x1f1   : > { %594 = vst.msk [vmem:[%s1182_s27 + $0x8] sm:$0xff] %vm271_vm0, %v586_v28 }
 0x1f2   : > { %v515_v30 = vpop.permute.xlu1 %514  ;;  %v563_v31 = vpop.permute.xlu0 %562 }
 0x1f3   : > { %v540_v23 = vmul.f32 %v515_v30, %v1079_v8 }
 0x1f5   : > { %v588_v32 = vadd.f32 %v563_v31, %v540_v23 }
 0x1f6   : > { %v520_v33 = vpop.permute.xlu1 %519  ;;  %v573_v35 = vpop.permute.xlu0 %572 }
 0x1f7   : > { %596 = vst.msk [vmem:[%s1182_s27 + $0x18] sm:$0xff] %vm271_vm0, %v588_v32 }
 0x1fa   : > { %v525_v7 = vpop.permute.xlu1 %524  ;;  %v583_v39 = vpop.permute.xlu0 %582 }
 0x1fb   : > { %v542_v34 = vmul.f32 %v525_v7, %v1081_v10 }
 0x1fd   : > { %v590_v36 = vadd.f32 %v573_v35, %v542_v34 }
 0x1fe   : > { %v530_v37 = vpop.permute.xlu1 %529 }
 0x1ff   : > { %598 = vst.msk [vmem:[%s1182_s27 + $0x28] sm:$0xff] %vm271_vm0, %v590_v36  ;;  %v543_v47 = vmul.f32 %v530_v37, %v1069_v3 }
 0x202   : > { %v535_v38 = vpop.permute.xlu1 %534 }
 0x203   : > { %v544_v8 = vmul.f32 %v535_v38, %v1083_v11  ;;  %v541_v11 = vmul.f32 %v520_v33, %v1067_v2 }
 0x205   : > { %v592_v41 = vadd.f32 %v583_v39, %v544_v8 }
 0x206   : > { %v548_v42 = vpop.permute.xlu1 %547 }
 0x207   : > { %600 = vst.msk [vmem:[%s1182_s27 + $0x38] sm:$0xff] %vm271_vm0, %v592_v41  ;;  %v585_v10 = vadd.f32 %v548_v42, %v537_v40 }
 0x209   : > { %593 = vst.msk [vmem:[%s1182_s27] sm:$0xff] %vm271_vm0, %v585_v10 }
 0x20a   : > { %v558_v44 = vpop.permute.xlu1 %557 }
 0x20b   : > { %v587_v45 = vadd.f32 %v558_v44, %v539_v43 }
 0x20d   : > { %595 = vst.msk [vmem:[%s1182_s27 + $0x10] sm:$0xff] %vm271_vm0, %v587_v45 }
 0x20e   : > { %v568_v0 = vpop.permute.xlu1 %567 }
 0x20f   : > { %v589_v46 = vadd.f32 %v568_v0, %v541_v11 }
 0x211   : > { %597 = vst.msk [vmem:[%s1182_s27 + $0x20] sm:$0xff] %vm271_vm0, %v589_v46 }
 0x212   : > { %v578_v1 = vpop.permute.xlu1 %577 }
 0x213   : > { %v591_v2 = vadd.f32 %v578_v1, %v543_v47 }
 0x215   : > { %599 = vst.msk [vmem:[%s1182_s27 + $0x30] sm:$0xff] %vm271_vm0, %v591_v2 }
 0x216   : > { %863 = shalt.err (!%p860_p6)
}
 0x217   : > { %s864_s16 = scalar_lea.hbm %s1210_s9, 1024  ;;  %s868_s25 = scalar_lea.hbm %s1267_s5, 2048 }
 0x218   : > { %p865_p7 = scmp.ne.s32.totalorder %s1210_s9, %s864_s16  ;;  %p869_p13 = scmp.lt.s32.totalorder %s1210_s9, %s1267_s5 }
 0x219   : > { %p870_p2 = scmp.lt.s32.totalorder %s868_s25, %s864_s16 }
 0x21a   : > { %p866_p10 = pnand %p865_p7, %p1020_p9 }
 0x21b   : > { %p871_p8 = por %p870_p2, %p869_p13 }
 0x21c   : > { %p867_p4 = pneg %p866_p10 }
 0x21e   : > { %p872_p12 = pnand %p871_p8, %p867_p4 }
 0x220   : > { %875 = shalt.err (!%p872_p12)
}
 0x221   : > { %s937_s10 = smov 128   ;;  %s938_s28 = smov 8  }
 0x222   : > { %739 = dma.vmem_to_hbm [thread:$0]  (%p1020_p9), %s1212_s29, 1024, %s1210_s9, %s602_s21, %s937_s10, %s937_s10, %s938_s28  }
 0x223 PF: > { %s632_s13 = sand.u32 1, %s910_s18   ;;  %p1273_p0 = scmp.ge.s32.totalorder %s930_s23, 2 }
 0x224   : > { %s633_s15 = scalar_lea.sflag [#allocation4], %s632_s13 }
 0x225   : > { %p746_p1 = pnand %p1273_p0, %p1027_p11 }
 0x227   : > { %p747_p3 = pneg %p746_p1 }
 0x229   : > { %905 = dma.done.wait (%p747_p3), %s633_s15, 1024  }
 0x22a   : > { %907 = vsyncadd (%p747_p3), %s633_s15, 4294966272  ;;  %s21_s23 = sadd.s32 1, %s930_s23   ;;  %s1274_s18 = smov %s914_s19 }
 0x22b   : > { %p18_p5 = scmp.ge.s32.totalorder %s21_s23, 4   ;;  %s1275_s19 = smov %s918_s20 }
 0x22c   : > { %s1276_s20 = smov %s1025_s7  ;;  %s1277_s21 = smov %s926_s22 }
 0x22d   : > { %s1278_s22 = smov %s1280_s26  ;;  %20 = sbr.rel (!%p18_p5) target bundleno = 6 (0x6), region = 85 }
 0x232   :  { %638 = vsyncpa [#allocation3], 1 }
 0x233   :  { %640 = vsyncpa [#allocation3 + $0x1], 1 }
 0x234   :  { %641 = vsyncpa [#allocation4], 1 }
 0x235   :  { %643 = vsyncpa [#allocation4 + $0x1], 1 }

</bundles_post_ra>
